<compile_context>
chip_gen: v6e
topology: v6e:2x2x1
jax: 0.10.0
libtpu: 0.0.40
codegen_flags: <defaults>
</compile_context>

<pallas_src>
import functools
import math

import jax
import jax.numpy as jnp
from jax.experimental import pallas as pl
from jax.experimental.pallas import tpu as pltpu


# ---------------------------------------------------------------------------
# Sizing helpers
# ---------------------------------------------------------------------------
def _round_up(x, m):
    return ((x + m - 1) // m) * m


def _divisors_desc(n):
    return [i for i in range(n, 0, -1) if n % i == 0]


def _tile_candidates(dim, align):
    """Divisors of `dim` that are multiples of `align`, descending.

    Falls back to multiples of 8, then to the full dim (a full-dim block is
    always layout-legal on TPU)."""
    c = [t for t in _divisors_desc(dim) if t % align == 0]
    if not c:
        c = [t for t in _divisors_desc(dim) if t % 8 == 0]
    return c or [dim]


def _head_group_candidates(h, d):
    """Head-group sizes g whose lane-dense output block (tq, g*D) is legal:
    g*D is a multiple of 128 or the block covers all heads (g == H)."""
    return [g for g in _divisors_desc(h) if g == h or (g * d) % 128 == 0]


def _vmem_limit_bytes():
    cap = 64 * 1024 * 1024                      # v7x-safe default
    try:
        cap = int(getattr(pltpu.get_tpu_info(), "vmem_capacity_bytes", cap))
    except Exception:
        pass
    # ~3/4 of physical, capped: 48 MiB on v7x (64 MiB), ~96 MiB on v5e/v6e.
    return min(cap * 3 // 4, 100 * 1024 * 1024)


def _attn_weights_tiles(h, d, t, s, kv_itemsize, vmem_limit):
    """(g, tq) for the full-S weights path, sized from the VMEM budget."""
    budget = max(vmem_limit // 2, 4 * 1024 * 1024)
    g_cands = _head_group_candidates(h, d)
    g_pref = [g for g in g_cands if g <= 8] or g_cands
    tq_cands = _tile_candidates(t, 16)
    tq_pref = [x for x in tq_cands if x <= 256] or tq_cands

    def need(g, tq):
        return (3 * 4 * g * tq * s                      # scores / exp / probs (f32)
                + 2 * 2 * g * s * d * kv_itemsize       # double-buffered K & V
                + 2 * 4 * tq * s)                       # double-buffered weights out

    for g in g_pref:
        for tq in tq_pref:
            if need(g, tq) <= budget:
                return g, tq
    return g_cands[-1], tq_cands[-1]


def _flash_tiles(h, d, t, s, kv_itemsize, vmem_limit):
    """(g, tq, tS) for the flash (no-weights) path."""
    budget = max(vmem_limit // 2, 4 * 1024 * 1024)
    g_cands = _head_group_candidates(h, d)
    g_pref = [g for g in g_cands if g <= 8] or g_cands
    tq_cands = _tile_candidates(t, 16)
    tq_pref = [x for x in tq_cands if x <= 256] or tq_cands
    ts_cands = _tile_candidates(s, 128)
    ts_pref = [x for x in ts_cands if x <= 512] or ts_cands

    def need(g, tq, ts):
        return (3 * 4 * g * tq * ts                     # scores / exp (f32)
                + 2 * 2 * g * ts * d * kv_itemsize      # double-buffered K & V tiles
                + 4 * g * tq * (d + 2))                 # acc / m / l scratch

    for g in g_pref:
        for tq in tq_pref:
            for ts in ts_pref:
                if need(g, tq, ts) <= budget:
                    return g, tq, ts
    return g_cands[-1], tq_cands[-1], ts_cands[-1]


def _merge_heads_lanes(o):
    """(g, tq, D) -> (tq, g*D) lane-dense, head-major along the lane axis."""
    return jnp.concatenate([o[i] for i in range(o.shape[0])], axis=-1)


# ---------------------------------------------------------------------------
# Tiled linear projection kernel: y = x @ w_t + b
# ---------------------------------------------------------------------------
def _linear_kernel(x_ref, w_ref, b_ref, o_ref, acc_ref):
    k = pl.program_id(2)

    @pl.when(k == 0)
    def _init():
        acc_ref[...] = jnp.zeros_like(acc_ref)

    acc_ref[...] += jnp.dot(x_ref[...], w_ref[...],
                            preferred_element_type=jnp.float32)

    @pl.when(k == pl.num_programs(2) - 1)
    def _finalize():
        o_ref[...] = (acc_ref[...] + b_ref[...]).astype(o_ref.dtype)


def linear(x, w_t, b, *, out_dtype, tm=512, tn=512, tk=2048):
    """y = x @ w_t + b.  x: (M, K), w_t: (K, N) (pre-transposed), b: (1, N) f32.

    Inputs are padded to tile multiples (zero padding on K is exact), the
    padded output is sliced back, so awkward shapes never silently fall back
    to one enormous full-dim block."""
    m, kdim = x.shape
    _, n = w_t.shape
    row_align = 16 if x.dtype.itemsize == 2 else 8   # bf16 packs 2 rows / sublane

    tm_e = min(tm, _round_up(m, row_align))
    tn_e = min(tn, _round_up(n, 128))
    tk_e = min(tk, _round_up(kdim, 128))             # K resident when small enough
    mp, np_, kp = _round_up(m, tm_e), _round_up(n, tn_e), _round_up(kdim, tk_e)

    if (mp, kp) != (m, kdim):
        x = jnp.pad(x, ((0, mp - m), (0, kp - kdim)))
    if (kp, np_) != (kdim, n):
        w_t = jnp.pad(w_t, ((0, kp - kdim), (0, np_ - n)))
    if np_ != n:
        b = jnp.pad(b, ((0, 0), (0, np_ - n)))

    vmem_limit = _vmem_limit_bytes()
    cost = pl.CostEstimate(
        flops=2 * m * n * kdim,
        transcendentals=0,
        bytes_accessed=int(m * kdim * x.dtype.itemsize
                           + kdim * n * w_t.dtype.itemsize
                           + m * n * jnp.dtype(out_dtype).itemsize
                           + n * 4),
    )

    out = pl.pallas_call(
        _linear_kernel,
        out_shape=jax.ShapeDtypeStruct((mp, np_), out_dtype),
        grid_spec=pltpu.PrefetchScalarGridSpec(
            num_scalar_prefetch=0,
            grid=(mp // tm_e, np_ // tn_e, kp // tk_e),
            in_specs=[
                pl.BlockSpec((tm_e, tk_e), lambda i, j, k: (i, k)),
                pl.BlockSpec((tk_e, tn_e), lambda i, j, k: (k, j)),
                pl.BlockSpec((1, tn_e), lambda i, j, k: (0, j)),
            ],
            out_specs=pl.BlockSpec((tm_e, tn_e), lambda i, j, k: (i, j)),
            scratch_shapes=[pltpu.VMEM((tm_e, tn_e), jnp.float32)],
        ),
        compiler_params=pltpu.CompilerParams(
            dimension_semantics=("parallel", "parallel", "arbitrary"),
            vmem_limit_bytes=vmem_limit,
        ),
        cost_estimate=cost,
    )(x, w_t, b)

    if (mp, np_) != (m, n):
        out = out[:m, :n]
    return out


# ---------------------------------------------------------------------------
# Attention kernel A: full-S pass with in-kernel head-averaged weights
# (used when need_weights=True; heads are the resident reduction axis).
# ---------------------------------------------------------------------------
def _attn_weights_kernel(q_ref, k_ref, v_ref, o_ref, w_ref, *, scaling, inv_heads):
    gi = pl.program_id(2)

    q = q_ref[0] * scaling                                   # scale q, not scores
    s = jnp.einsum('gtd,gsd->gts', q, k_ref[0],
                   preferred_element_type=jnp.float32)       # (g, tq, S) f32

    m = jnp.max(s, axis=-1, keepdims=True)
    p = jnp.exp(s - m)
    denom = jnp.sum(p, axis=-1, keepdims=True)
    probs = p / denom          # exact reciprocal: these feed the returned weights

    o = jnp.einsum('gts,gsd->gtd', probs.astype(v_ref.dtype), v_ref[0],
                   preferred_element_type=jnp.float32)       # (g, tq, D) f32
    o_ref[0] = _merge_heads_lanes(o).astype(o_ref.dtype)     # lane-dense (tq, g*D)

    # Head-averaged weights: accumulate raw sums over the resident block and
    # apply 1/H once on the last head-group step.
    @pl.when(gi == 0)
    def _init():
        w_ref[...] = jnp.zeros_like(w_ref)

    w_ref[...] += jnp.sum(probs, axis=0)[None]

    @pl.when(gi == pl.num_programs(2) - 1)
    def _finalize():
        w_ref[...] = w_ref[...] * inv_heads


def attention_with_weights(q, k, v, *, scaling):
    """q, k, v: (B, H, T/S, D) -> (attn (B, T, H*D), avg_weights (B, T, S))."""
    b, h, t, d = q.shape
    s = k.shape[2]
    vmem_limit = _vmem_limit_bytes()
    g, tq = _attn_weights_tiles(h, d, t, s, q.dtype.itemsize, vmem_limit)
    grid = (b, t // tq, h // g)                  # head (reduction) axis last

    kernel = functools.partial(_attn_weights_kernel, scaling=scaling,
                               inv_heads=1.0 / h)
    cost = pl.CostEstimate(
        flops=2 * 2 * b * h * t * s * d,
        transcendentals=b * h * t * s,
        bytes_accessed=int((b * h * t * d
                            + 2 * (t // tq) * b * h * s * d
                            + b * t * h * d) * q.dtype.itemsize
                           + b * t * s * 4),
    )

    return pl.pallas_call(
        kernel,
        out_shape=(
            jax.ShapeDtypeStruct((b, t, h * d), q.dtype),
            jax.ShapeDtypeStruct((b, t, s), jnp.float32),
        ),
        grid_spec=pltpu.PrefetchScalarGridSpec(
            num_scalar_prefetch=0,
            grid=grid,
            in_specs=[
                pl.BlockSpec((1, g, tq, d), lambda bi, qi, gi: (bi, gi, qi, 0)),
                pl.BlockSpec((1, g, s, d), lambda bi, qi, gi: (bi, gi, 0, 0)),
                pl.BlockSpec((1, g, s, d), lambda bi, qi, gi: (bi, gi, 0, 0)),
            ],
            out_specs=[
                pl.BlockSpec((1, tq, g * d), lambda bi, qi, gi: (bi, qi, gi)),
                pl.BlockSpec((1, tq, s), lambda bi, qi, gi: (bi, qi, 0)),
            ],
        ),
        compiler_params=pltpu.CompilerParams(
            dimension_semantics=("parallel", "parallel", "arbitrary"),
            vmem_limit_bytes=vmem_limit,
        ),
        cost_estimate=cost,
    )(q, k, v)


# ---------------------------------------------------------------------------
# Attention kernel B: flash-style online softmax over a KV grid axis
# (used when need_weights=False; bounded VMEM for any S).
# ---------------------------------------------------------------------------
def _flash_attn_kernel(q_ref, k_ref, v_ref, o_ref, m_sc, l_sc, acc_sc, *, scaling):
    si = pl.program_id(3)

    @pl.when(si == 0)
    def _init():
        m_sc[...] = jnp.full_like(m_sc, -jnp.inf)
        l_sc[...] = jnp.zeros_like(l_sc)
        acc_sc[...] = jnp.zeros_like(acc_sc)

    q = q_ref[0] * scaling                                   # (g, tq, D)
    s = jnp.einsum('gtd,gsd->gts', q, k_ref[0],
                   preferred_element_type=jnp.float32)       # (g, tq, tS) f32

    m_prev = m_sc[...]
    m_new = jnp.maximum(m_prev, jnp.max(s, axis=-1, keepdims=True))
    alpha = jnp.exp(m_prev - m_new)
    p = jnp.exp(s - m_new)
    l_sc[...] = alpha * l_sc[...] + jnp.sum(p, axis=-1, keepdims=True)
    acc_sc[...] = alpha * acc_sc[...] + jnp.einsum(
        'gts,gsd->gtd', p.astype(v_ref.dtype), v_ref[0],
        preferred_element_type=jnp.float32)
    m_sc[...] = m_new

    @pl.when(si == pl.num_programs(3) - 1)
    def _finalize():
        o = acc_sc[...] * pl.reciprocal(l_sc[...], approx=True)
        o_ref[0] = _merge_heads_lanes(o).astype(o_ref.dtype)


def flash_attention(q, k, v, *, scaling):
    """q, k, v: (B, H, T/S, D) -> attn (B, T, H*D).  No weights output."""
    b, h, t, d = q.shape
    s = k.shape[2]
    vmem_limit = _vmem_limit_bytes()
    g, tq, ts = _flash_tiles(h, d, t, s, q.dtype.itemsize, vmem_limit)
    grid = (b, h // g, t // tq, s // ts)          # KV (reduction) axis last

    kernel = functools.partial(_flash_attn_kernel, scaling=scaling)
    cost = pl.CostEstimate(
        flops=2 * 2 * b * h * t * s * d,
        transcendentals=b * h * t * s,
        bytes_accessed=int((b * h * t * d
                            + 2 * (t // tq) * b * h * s * d
                            + b * t * h * d) * q.dtype.itemsize),
    )

    return pl.pallas_call(
        kernel,
        out_shape=jax.ShapeDtypeStruct((b, t, h * d), q.dtype),
        grid_spec=pltpu.PrefetchScalarGridSpec(
            num_scalar_prefetch=0,
            grid=grid,
            in_specs=[
                pl.BlockSpec((1, g, tq, d), lambda bi, gi, qi, si: (bi, gi, qi, 0)),
                pl.BlockSpec((1, g, ts, d), lambda bi, gi, qi, si: (bi, gi, si, 0)),
                pl.BlockSpec((1, g, ts, d), lambda bi, gi, qi, si: (bi, gi, si, 0)),
            ],
            out_specs=pl.BlockSpec((1, tq, g * d),
                                   lambda bi, gi, qi, si: (bi, qi, gi)),
            scratch_shapes=[
                pltpu.VMEM((g, tq, 1), jnp.float32),   # running max
                pltpu.VMEM((g, tq, 1), jnp.float32),   # running denom
                pltpu.VMEM((g, tq, d), jnp.float32),   # output accumulator
            ],
        ),
        compiler_params=pltpu.CompilerParams(
            dimension_semantics=("parallel", "parallel", "parallel", "arbitrary"),
            vmem_limit_bytes=vmem_limit,
        ),
        cost_estimate=cost,
    )(q, k, v)


# ---------------------------------------------------------------------------
# MultiheadAttention module (self-attention path)
# ---------------------------------------------------------------------------
class MultiheadAttentionPallas:
    def __init__(self, embed_dim, num_heads, key, compute_dtype=jnp.bfloat16):
        self.embed_dim = embed_dim
        self.num_heads = num_heads
        self.head_dim = embed_dim // num_heads
        assert self.head_dim * num_heads == embed_dim
        self.scaling = self.head_dim ** (-0.5)
        self.compute_dtype = compute_dtype

        k1, k2 = jax.random.split(key)

        # xavier_uniform for in_proj_weight (3E, E)
        bound_in = math.sqrt(6.0 / (3 * embed_dim + embed_dim))
        self.in_proj_weight = jax.random.uniform(
            k1, (3 * embed_dim, embed_dim), jnp.float32, -bound_in, bound_in)
        self.in_proj_bias = jnp.zeros((3 * embed_dim,), jnp.float32)

        # out_proj: nn.Linear(embed_dim, embed_dim), xavier_uniform, zero bias
        bound_out = math.sqrt(6.0 / (embed_dim + embed_dim))
        self.out_proj_weight = jax.random.uniform(
            k2, (embed_dim, embed_dim), jnp.float32, -bound_out, bound_out)
        self.out_proj_bias = jnp.zeros((embed_dim,), jnp.float32)

        # Pre-transposed / pre-cast copies for the MXU kernels (done once).
        self.w_in = self.in_proj_weight.T.astype(compute_dtype)     # (E, 3E)
        self.b_in = self.in_proj_bias.reshape(1, -1)                 # f32 (1, 3E)
        self.w_out = self.out_proj_weight.T.astype(compute_dtype)   # (E, E)
        self.b_out = self.out_proj_bias.reshape(1, -1)               # f32 (1, E)

    def __call__(self, query, need_weights=True):
        # query: (T, B, E)
        tgt_len, bsz, embed_dim = query.shape
        assert embed_dim == self.embed_dim
        H, D = self.num_heads, self.head_dim
        cd = self.compute_dtype

        # --- fused QKV input projection (tiled Pallas matmul) -----------------
        x = query.reshape(tgt_len * bsz, embed_dim).astype(cd)
        qkv = linear(x, self.w_in, self.b_in, out_dtype=cd)          # (T*B, 3E)

        # One layout pass: (T*B, 3E) -> (3, B, H, T, D)
        # TODO(synk): read q/k/v directly from the (T, B, 3, H, D) view inside
        # the attention kernels (strided in_specs) to drop this transpose.
        qkv = qkv.reshape(tgt_len, bsz, 3, H, D).transpose(2, 1, 3, 0, 4)
        q, k, v = qkv[0], qkv[1], qkv[2]                             # (B, H, T, D)

        # --- scaled dot-product attention -------------------------------------
        if need_weights:
            attn, attn_weights = attention_with_weights(q, k, v,
                                                        scaling=self.scaling)
        else:
            attn = flash_attention(q, k, v, scaling=self.scaling)
            attn_weights = None

        # --- output projection (attn already lane-dense (B, T, E)) ------------
        y = linear(attn.reshape(bsz * tgt_len, embed_dim),
                   self.w_out, self.b_out, out_dtype=jnp.float32)
        y = y.reshape(bsz, tgt_len, embed_dim).transpose(1, 0, 2)    # (T, B, E)

        return y, attn_weights


# ---------------------------------------------------------------------------
# Pure-JAX float32 reference (mirrors the PyTorch forward) for sanity checks
# ---------------------------------------------------------------------------
def reference_forward(mod, query):
    T, B, E = query.shape
    H, D = mod.num_heads, mod.head_dim
    qkv = query @ mod.in_proj_weight.T + mod.in_proj_bias
    q, k, v = jnp.split(qkv, 3, axis=-1)
    q = q * mod.scaling
    q = q.reshape(T, B * H, D).transpose(1, 0, 2)
    k = k.reshape(T, B * H, D).transpose(1, 0, 2)
    v = v.reshape(T, B * H, D).transpose(1, 0, 2)
    w = jnp.einsum('btd,bsd->bts', q, k)
    w = jax.nn.softmax(w, axis=-1)
    a = jnp.einsum('bts,bsd->btd', w, v)
    a = a.transpose(1, 0, 2).reshape(T, B, E)
    a = a @ mod.out_proj_weight.T + mod.out_proj_bias
    aw = w.reshape(B, H, T, T).sum(axis=1) / H
    return a, aw


if __name__ == "__main__":
    key = jax.random.PRNGKey(0)
    kparam, kdata = jax.random.split(key)

    T, B, E, H = 8, 2, 32, 4
    query = jax.random.normal(kdata, (T, B, E), dtype=jnp.float32)

    # float32 compute path, need_weights=True (fairseq default)
    mha_f32 = MultiheadAttentionPallas(E, H, key=kparam,
                                       compute_dtype=jnp.float32)
    attn32, w32 = jax.jit(mha_f32.__call__)(query)
    jax.block_until_ready(attn32)
    jax.block_until_ready(w32)

    ref_attn, ref_w = reference_forward(mha_f32, query)
    assert attn32.shape == (T, B, E)
    assert w32.shape == (B, T, T)
    assert jnp.allclose(attn32, ref_attn, atol=1e-2, rtol=1e-2)
    assert jnp.allclose(w32, ref_w, atol=1e-2, rtol=1e-2)

    # float32 compute path, need_weights=False -> flash online-softmax kernel
    attn_fl, w_none = jax.jit(
        functools.partial(mha_f32.__call__, need_weights=False))(query)
    jax.block_until_ready(attn_fl)
    assert w_none is None
    assert jnp.allclose(attn_fl, ref_attn, atol=2e-2, rtol=2e-2)

    # bfloat16 compute path (default, MXU-friendly) — looser tolerance
    mha_bf16 = MultiheadAttentionPallas(E, H, key=kparam,
                                        compute_dtype=jnp.bfloat16)
    attn16, w16 = jax.jit(mha_bf16.__call__)(query)
    jax.block_until_ready(attn16)
    jax.block_until_ready(w16)
    assert jnp.allclose(attn16.astype(jnp.float32), ref_attn,
                        atol=7e-2, rtol=7e-2)
    assert jnp.allclose(w16, ref_w, atol=7e-2, rtol=7e-2)

    print("KERNEL_OK")
</pallas_src>

<mosaic_0001>
module attributes {stable_mosaic.version = 11 : i64} {
  func.func @_linear_kernel(%arg0: i32, %arg1: i32, %arg2: i32, %arg3: memref<16x128xf32, #tpu.memory_space<vmem>>, %arg4: memref<128x128xf32, #tpu.memory_space<vmem>>, %arg5: memref<1x128xf32, #tpu.memory_space<vmem>>, %arg6: memref<16x128xf32, #tpu.memory_space<vmem>>, %arg7: memref<16x128xf32, #tpu.memory_space<vmem>>) attributes {dimension_semantics = [#tpu.dimension_semantics<parallel>, #tpu.dimension_semantics<parallel>, #tpu.dimension_semantics<arbitrary>], iteration_bounds = array<i64: 1, 1, 1>, scalar_prefetch = 0 : i64, scratch_operands = 1 : i64, tpu.core_type = #tpu.core_type<tc>, window_params = [{transform_indices = @transform_0, window_bounds = array<i64: 16, 128>}, {transform_indices = @transform_1, window_bounds = array<i64: 128, 128>}, {transform_indices = @transform_2, window_bounds = array<i64: 1, 128>}, {transform_indices = @transform_3, window_bounds = array<i64: 16, 128>}]} {
    %c0_i32 = arith.constant 0 : i32
    %0 = arith.cmpi eq, %arg2, %c0_i32 : i32
    %1 = arith.extui %0 : i1 to i32
    %c0_i32_0 = arith.constant 0 : i32
    %2 = arith.cmpi ne, %1, %c0_i32_0 : i32
    scf.if %2 {
      %cst_10 = arith.constant 0.000000e+00 : f32
      %12 = vector.broadcast %cst_10 : f32 to vector<16x128xf32>
      %c0_11 = arith.constant 0 : index
      %c0_12 = arith.constant 0 : index
      %13 = vector.load %arg7[%c0_11, %c0_12] : memref<16x128xf32, #tpu.memory_space<vmem>>, vector<16x128xf32>
      tpu.vector_store %arg7[%c0_11, %c0_12], %12 {strides = array<i32>} : memref<16x128xf32, #tpu.memory_space<vmem>>, vector<16x128xf32>,
    } else {
    }
    %c0 = arith.constant 0 : index
    %c0_1 = arith.constant 0 : index
    %3 = vector.load %arg7[%c0, %c0_1] : memref<16x128xf32, #tpu.memory_space<vmem>>, vector<16x128xf32>
    %c0_2 = arith.constant 0 : index
    %c0_3 = arith.constant 0 : index
    %4 = vector.load %arg3[%c0_2, %c0_3] : memref<16x128xf32, #tpu.memory_space<vmem>>, vector<16x128xf32>
    %c0_4 = arith.constant 0 : index
    %c0_5 = arith.constant 0 : index
    %5 = vector.load %arg4[%c0_4, %c0_5] : memref<128x128xf32, #tpu.memory_space<vmem>>, vector<128x128xf32>
    %cst = arith.constant dense<0.000000e+00> : vector<16x128xf32>
    %6 = tpu.matmul %4, %5, %cst {dimension_numbers = #tpu.dot_dimension_numbers<[1], [0], [0], [1], [0, 0, 1, 1], [], []>} : vector<16x128xf32>, vector<128x128xf32>, vector<16x128xf32> -> vector<16x128xf32>
    %7 = arith.addf %3, %6 : vector<16x128xf32>
    %c0_6 = arith.constant 0 : index
    %c0_7 = arith.constant 0 : index
    %8 = vector.load %arg7[%c0_6, %c0_7] : memref<16x128xf32, #tpu.memory_space<vmem>>, vector<16x128xf32>
    tpu.vector_store %arg7[%c0_6, %c0_7], %7 {strides = array<i32>} : memref<16x128xf32, #tpu.memory_space<vmem>>, vector<16x128xf32>,
    %c0_i32_8 = arith.constant 0 : i32
    %9 = arith.cmpi eq, %arg2, %c0_i32_8 : i32
    %10 = arith.extui %9 : i1 to i32
    %c0_i32_9 = arith.constant 0 : i32
    %11 = arith.cmpi ne, %10, %c0_i32_9 : i32
    scf.if %11 {
      %c0_10 = arith.constant 0 : index
      %c0_11 = arith.constant 0 : index
      %12 = vector.load %arg7[%c0_10, %c0_11] : memref<16x128xf32, #tpu.memory_space<vmem>>, vector<16x128xf32>
      %c0_12 = arith.constant 0 : index
      %c0_13 = arith.constant 0 : index
      %13 = vector.load %arg5[%c0_12, %c0_13] : memref<1x128xf32, #tpu.memory_space<vmem>>, vector<1x128xf32>
      %14 = vector.broadcast %13 : vector<1x128xf32> to vector<16x128xf32>
      %15 = arith.addf %12, %14 : vector<16x128xf32>
      %c0_14 = arith.constant 0 : index
      %c0_15 = arith.constant 0 : index
      %16 = vector.load %arg6[%c0_14, %c0_15] : memref<16x128xf32, #tpu.memory_space<vmem>>, vector<16x128xf32>
      tpu.vector_store %arg6[%c0_14, %c0_15], %15 {strides = array<i32>} : memref<16x128xf32, #tpu.memory_space<vmem>>, vector<16x128xf32>,
    } else {
    }
    return
  }
  func.func @transform_0(%arg0: i32, %arg1: i32, %arg2: i32) -> (i32, i32) {
    %c0_i32 = arith.constant 0 : i32
    return %arg0, %arg2 : i32, i32
  }
  func.func @transform_1(%arg0: i32, %arg1: i32, %arg2: i32) -> (i32, i32) {
    %c0_i32 = arith.constant 0 : i32
    return %arg2, %arg1 : i32, i32
  }
  func.func @transform_2(%arg0: i32, %arg1: i32, %arg2: i32) -> (i32, i32) {
    %c0_i32 = arith.constant 0 : i32
    %c0_i32_0 = arith.constant 0 : i32
    return %c0_i32, %arg1 : i32, i32
  }
  func.func @transform_3(%arg0: i32, %arg1: i32, %arg2: i32) -> (i32, i32) {
    %c0_i32 = arith.constant 0 : i32
    return %arg0, %arg1 : i32, i32
  }
}

module attributes {stable_mosaic.version = 11 : i64} {
  func.func @_attn_weights_kernel(%arg0: i32, %arg1: i32, %arg2: i32, %arg3: memref<1x4x8x8xf32, #tpu.memory_space<vmem>>, %arg4: memref<1x4x8x8xf32, #tpu.memory_space<vmem>>, %arg5: memref<1x4x8x8xf32, #tpu.memory_space<vmem>>, %arg6: memref<1x8x32xf32, #tpu.memory_space<vmem>>, %arg7: memref<1x8x8xf32, #tpu.memory_space<vmem>>) attributes {dimension_semantics = [#tpu.dimension_semantics<parallel>, #tpu.dimension_semantics<parallel>, #tpu.dimension_semantics<arbitrary>], iteration_bounds = array<i64: 2, 1, 1>, scalar_prefetch = 0 : i64, scratch_operands = 0 : i64, tpu.core_type = #tpu.core_type<tc>, window_params = [{transform_indices = @transform_0, window_bounds = array<i64: 1, 4, 8, 8>}, {transform_indices = @transform_1, window_bounds = array<i64: 1, 4, 8, 8>}, {transform_indices = @transform_2, window_bounds = array<i64: 1, 4, 8, 8>}, {transform_indices = @transform_3, window_bounds = array<i64: 1, 8, 32>}, {transform_indices = @transform_4, window_bounds = array<i64: 1, 8, 8>}]} {
    %c0 = arith.constant 0 : index
    %c0_0 = arith.constant 0 : index
    %c0_1 = arith.constant 0 : index
    %c0_2 = arith.constant 0 : index
    %0 = vector.load %arg3[%c0, %c0_0, %c0_1, %c0_2] : memref<1x4x8x8xf32, #tpu.memory_space<vmem>>, vector<1x4x8x8xf32>
    %1 = vector.shape_cast %0 : vector<1x4x8x8xf32> to vector<4x8x8xf32>
    %cst = arith.constant 0.353553385 : f32
    %2 = vector.broadcast %cst : f32 to vector<4x8x8xf32>
    %3 = arith.mulf %1, %2 : vector<4x8x8xf32>
    %c0_3 = arith.constant 0 : index
    %c0_4 = arith.constant 0 : index
    %c0_5 = arith.constant 0 : index
    %c0_6 = arith.constant 0 : index
    %4 = vector.load %arg4[%c0_3, %c0_4, %c0_5, %c0_6] : memref<1x4x8x8xf32, #tpu.memory_space<vmem>>, vector<1x4x8x8xf32>
    %5 = vector.shape_cast %4 : vector<1x4x8x8xf32> to vector<4x8x8xf32>
    "tpu.trace_start"() <{level = 10 : i32, message = "gtd,gsd->gts"}> : () -> ()
    %cst_7 = arith.constant dense<0.000000e+00> : vector<4x8x8xf32>
    %6 = tpu.matmul %3, %5, %cst_7 {dimension_numbers = #tpu.dot_dimension_numbers<[2], [2], [1], [1], [0, 0, 0, 1, 1, 1], [0], [0]>} : vector<4x8x8xf32>, vector<4x8x8xf32>, vector<4x8x8xf32> -> vector<4x8x8xf32>
    "tpu.trace_stop"() : () -> ()
    %cst_8 = arith.constant dense<0xFF800000> : vector<4x8xf32>
    %7 = vector.multi_reduction <maximumf>, %6, %cst_8 [2] : vector<4x8x8xf32> to vector<4x8xf32>
    %8 = vector.shape_cast %7 : vector<4x8xf32> to vector<4x8x1xf32>
    %9 = vector.broadcast %8 : vector<4x8x1xf32> to vector<4x8x8xf32>
    %10 = arith.subf %6, %9 : vector<4x8x8xf32>
    %11 = math.exp %10 : vector<4x8x8xf32>
    %cst_9 = arith.constant dense<0.000000e+00> : vector<4x8xf32>
    %12 = vector.multi_reduction <add>, %11, %cst_9 [2] : vector<4x8x8xf32> to vector<4x8xf32>
    %13 = vector.shape_cast %12 : vector<4x8xf32> to vector<4x8x1xf32>
    %14 = vector.broadcast %13 : vector<4x8x1xf32> to vector<4x8x8xf32>
    %15 = arith.divf %11, %14 : vector<4x8x8xf32>
    %c0_10 = arith.constant 0 : index
    %c0_11 = arith.constant 0 : index
    %c0_12 = arith.constant 0 : index
    %c0_13 = arith.constant 0 : index
    %16 = vector.load %arg5[%c0_10, %c0_11, %c0_12, %c0_13] : memref<1x4x8x8xf32, #tpu.memory_space<vmem>>, vector<1x4x8x8xf32>
    %17 = vector.shape_cast %16 : vector<1x4x8x8xf32> to vector<4x8x8xf32>
    "tpu.trace_start"() <{level = 10 : i32, message = "gts,gsd->gtd"}> : () -> ()
    %cst_14 = arith.constant dense<0.000000e+00> : vector<4x8x8xf32>
    %18 = tpu.matmul %15, %17, %cst_14 {dimension_numbers = #tpu.dot_dimension_numbers<[2], [1], [1], [2], [0, 0, 0, 1, 1, 2], [0], [0]>} : vector<4x8x8xf32>, vector<4x8x8xf32>, vector<4x8x8xf32> -> vector<4x8x8xf32>
    "tpu.trace_stop"() : () -> ()
    %19 = vector.extract_strided_slice %18 {offsets = [0, 0, 0], sizes = [1, 8, 8], strides = [1, 1, 1]} : vector<4x8x8xf32> to vector<1x8x8xf32>
    %20 = vector.shape_cast %19 : vector<1x8x8xf32> to vector<8x8xf32>
    %21 = vector.extract_strided_slice %18 {offsets = [1, 0, 0], sizes = [1, 8, 8], strides = [1, 1, 1]} : vector<4x8x8xf32> to vector<1x8x8xf32>
    %22 = vector.shape_cast %21 : vector<1x8x8xf32> to vector<8x8xf32>
    %23 = vector.extract_strided_slice %18 {offsets = [2, 0, 0], sizes = [1, 8, 8], strides = [1, 1, 1]} : vector<4x8x8xf32> to vector<1x8x8xf32>
    %24 = vector.shape_cast %23 : vector<1x8x8xf32> to vector<8x8xf32>
    %25 = vector.extract_strided_slice %18 {offsets = [3, 0, 0], sizes = [1, 8, 8], strides = [1, 1, 1]} : vector<4x8x8xf32> to vector<1x8x8xf32>
    %26 = vector.shape_cast %25 : vector<1x8x8xf32> to vector<8x8xf32>
    %27 = tpu.concatenate %20, %22, %24, %26 in 1 : vector<8x8xf32>, vector<8x8xf32>, vector<8x8xf32>, vector<8x8xf32> -> vector<8x32xf32>
    %c0_15 = arith.constant 0 : index
    %c0_16 = arith.constant 0 : index
    %c0_17 = arith.constant 0 : index
    %28 = vector.load %arg6[%c0_15, %c0_16, %c0_17] : memref<1x8x32xf32, #tpu.memory_space<vmem>>, vector<1x8x32xf32>
    %29 = vector.shape_cast %28 : vector<1x8x32xf32> to vector<8x32xf32>
    %30 = vector.shape_cast %27 : vector<8x32xf32> to vector<1x8x32xf32>
    tpu.vector_store %arg6[%c0_15, %c0_16, %c0_17], %30 {strides = array<i32>} : memref<1x8x32xf32, #tpu.memory_space<vmem>>, vector<1x8x32xf32>,
    %c0_i32 = arith.constant 0 : i32
    %31 = arith.cmpi eq, %arg2, %c0_i32 : i32
    %32 = arith.extui %31 : i1 to i32
    %c0_i32_18 = arith.constant 0 : i32
    %33 = arith.cmpi ne, %32, %c0_i32_18 : i32
    scf.if %33 {
      %cst_28 = arith.constant 0.000000e+00 : f32
      %42 = vector.broadcast %cst_28 : f32 to vector<1x8x8xf32>
      %c0_29 = arith.constant 0 : index
      %c0_30 = arith.constant 0 : index
      %c0_31 = arith.constant 0 : index
      %43 = vector.load %arg7[%c0_29, %c0_30, %c0_31] : memref<1x8x8xf32, #tpu.memory_space<vmem>>, vector<1x8x8xf32>
      tpu.vector_store %arg7[%c0_29, %c0_30, %c0_31], %42 {strides = array<i32>} : memref<1x8x8xf32, #tpu.memory_space<vmem>>, vector<1x8x8xf32>,
    } else {
    }
    %c0_19 = arith.constant 0 : index
    %c0_20 = arith.constant 0 : index
    %c0_21 = arith.constant 0 : index
    %34 = vector.load %arg7[%c0_19, %c0_20, %c0_21] : memref<1x8x8xf32, #tpu.memory_space<vmem>>, vector<1x8x8xf32>
    %cst_22 = arith.constant dense<0.000000e+00> : vector<8x8xf32>
    %35 = vector.multi_reduction <add>, %15, %cst_22 [0] : vector<4x8x8xf32> to vector<8x8xf32>
    %36 = vector.shape_cast %35 : vector<8x8xf32> to vector<1x8x8xf32>
    %37 = arith.addf %34, %36 : vector<1x8x8xf32>
    %c0_23 = arith.constant 0 : index
    %c0_24 = arith.constant 0 : index
    %c0_25 = arith.constant 0 : index
    %38 = vector.load %arg7[%c0_23, %c0_24, %c0_25] : memref<1x8x8xf32, #tpu.memory_space<vmem>>, vector<1x8x8xf32>
    tpu.vector_store %arg7[%c0_23, %c0_24, %c0_25], %37 {strides = array<i32>} : memref<1x8x8xf32, #tpu.memory_space<vmem>>, vector<1x8x8xf32>,
    %c0_i32_26 = arith.constant 0 : i32
    %39 = arith.cmpi eq, %arg2, %c0_i32_26 : i32
    %40 = arith.extui %39 : i1 to i32
    %c0_i32_27 = arith.constant 0 : i32
    %41 = arith.cmpi ne, %40, %c0_i32_27 : i32
    scf.if %41 {
      %c0_28 = arith.constant 0 : index
      %c0_29 = arith.constant 0 : index
      %c0_30 = arith.constant 0 : index
      %42 = vector.load %arg7[%c0_28, %c0_29, %c0_30] : memref<1x8x8xf32, #tpu.memory_space<vmem>>, vector<1x8x8xf32>
      %cst_31 = arith.constant 2.500000e-01 : f32
      %43 = vector.broadcast %cst_31 : f32 to vector<1x8x8xf32>
      %44 = arith.mulf %42, %43 : vector<1x8x8xf32>
      %c0_32 = arith.constant 0 : index
      %c0_33 = arith.constant 0 : index
      %c0_34 = arith.constant 0 : index
      %45 = vector.load %arg7[%c0_32, %c0_33, %c0_34] : memref<1x8x8xf32, #tpu.memory_space<vmem>>, vector<1x8x8xf32>
      tpu.vector_store %arg7[%c0_32, %c0_33, %c0_34], %44 {strides = array<i32>} : memref<1x8x8xf32, #tpu.memory_space<vmem>>, vector<1x8x8xf32>,
    } else {
    }
    return
  }
  func.func @transform_0(%arg0: i32, %arg1: i32, %arg2: i32) -> (i32, i32, i32, i32) {
    %c0_i32 = arith.constant 0 : i32
    %c0_i32_0 = arith.constant 0 : i32
    return %arg0, %arg2, %arg1, %c0_i32 : i32, i32, i32, i32
  }
  func.func @transform_1(%arg0: i32, %arg1: i32, %arg2: i32) -> (i32, i32, i32, i32) {
    %c0_i32 = arith.constant 0 : i32
    %c0_i32_0 = arith.constant 0 : i32
    %c0_i32_1 = arith.constant 0 : i32
    return %arg0, %arg2, %c0_i32, %c0_i32_0 : i32, i32, i32, i32
  }
  func.func @transform_2(%arg0: i32, %arg1: i32, %arg2: i32) -> (i32, i32, i32, i32) {
    %c0_i32 = arith.constant 0 : i32
    %c0_i32_0 = arith.constant 0 : i32
    %c0_i32_1 = arith.constant 0 : i32
    return %arg0, %arg2, %c0_i32, %c0_i32_0 : i32, i32, i32, i32
  }
  func.func @transform_3(%arg0: i32, %arg1: i32, %arg2: i32) -> (i32, i32, i32) {
    %c0_i32 = arith.constant 0 : i32
    return %arg0, %arg1, %arg2 : i32, i32, i32
  }
  func.func @transform_4(%arg0: i32, %arg1: i32, %arg2: i32) -> (i32, i32, i32) {
    %c0_i32 = arith.constant 0 : i32
    %c0_i32_0 = arith.constant 0 : i32
    return %arg0, %arg1, %c0_i32 : i32, i32, i32
  }
}

module attributes {stable_mosaic.version = 11 : i64} {
  func.func @_linear_kernel(%arg0: i32, %arg1: i32, %arg2: i32, %arg3: memref<16x128xf32, #tpu.memory_space<vmem>>, %arg4: memref<128x128xf32, #tpu.memory_space<vmem>>, %arg5: memref<1x128xf32, #tpu.memory_space<vmem>>, %arg6: memref<16x128xf32, #tpu.memory_space<vmem>>, %arg7: memref<16x128xf32, #tpu.memory_space<vmem>>) attributes {dimension_semantics = [#tpu.dimension_semantics<parallel>, #tpu.dimension_semantics<parallel>, #tpu.dimension_semantics<arbitrary>], iteration_bounds = array<i64: 1, 1, 1>, scalar_prefetch = 0 : i64, scratch_operands = 1 : i64, tpu.core_type = #tpu.core_type<tc>, window_params = [{transform_indices = @transform_0, window_bounds = array<i64: 16, 128>}, {transform_indices = @transform_1, window_bounds = array<i64: 128, 128>}, {transform_indices = @transform_2, window_bounds = array<i64: 1, 128>}, {transform_indices = @transform_3, window_bounds = array<i64: 16, 128>}]} {
    %c0_i32 = arith.constant 0 : i32
    %0 = arith.cmpi eq, %arg2, %c0_i32 : i32
    %1 = arith.extui %0 : i1 to i32
    %c0_i32_0 = arith.constant 0 : i32
    %2 = arith.cmpi ne, %1, %c0_i32_0 : i32
    scf.if %2 {
      %cst_10 = arith.constant 0.000000e+00 : f32
      %12 = vector.broadcast %cst_10 : f32 to vector<16x128xf32>
      %c0_11 = arith.constant 0 : index
      %c0_12 = arith.constant 0 : index
      %13 = vector.load %arg7[%c0_11, %c0_12] : memref<16x128xf32, #tpu.memory_space<vmem>>, vector<16x128xf32>
      tpu.vector_store %arg7[%c0_11, %c0_12], %12 {strides = array<i32>} : memref<16x128xf32, #tpu.memory_space<vmem>>, vector<16x128xf32>,
    } else {
    }
    %c0 = arith.constant 0 : index
    %c0_1 = arith.constant 0 : index
    %3 = vector.load %arg7[%c0, %c0_1] : memref<16x128xf32, #tpu.memory_space<vmem>>, vector<16x128xf32>
    %c0_2 = arith.constant 0 : index
    %c0_3 = arith.constant 0 : index
    %4 = vector.load %arg3[%c0_2, %c0_3] : memref<16x128xf32, #tpu.memory_space<vmem>>, vector<16x128xf32>
    %c0_4 = arith.constant 0 : index
    %c0_5 = arith.constant 0 : index
    %5 = vector.load %arg4[%c0_4, %c0_5] : memref<128x128xf32, #tpu.memory_space<vmem>>, vector<128x128xf32>
    %cst = arith.constant dense<0.000000e+00> : vector<16x128xf32>
    %6 = tpu.matmul %4, %5, %cst {dimension_numbers = #tpu.dot_dimension_numbers<[1], [0], [0], [1], [0, 0, 1, 1], [], []>} : vector<16x128xf32>, vector<128x128xf32>, vector<16x128xf32> -> vector<16x128xf32>
    %7 = arith.addf %3, %6 : vector<16x128xf32>
    %c0_6 = arith.constant 0 : index
    %c0_7 = arith.constant 0 : index
    %8 = vector.load %arg7[%c0_6, %c0_7] : memref<16x128xf32, #tpu.memory_space<vmem>>, vector<16x128xf32>
    tpu.vector_store %arg7[%c0_6, %c0_7], %7 {strides = array<i32>} : memref<16x128xf32, #tpu.memory_space<vmem>>, vector<16x128xf32>,
    %c0_i32_8 = arith.constant 0 : i32
    %9 = arith.cmpi eq, %arg2, %c0_i32_8 : i32
    %10 = arith.extui %9 : i1 to i32
    %c0_i32_9 = arith.constant 0 : i32
    %11 = arith.cmpi ne, %10, %c0_i32_9 : i32
    scf.if %11 {
      %c0_10 = arith.constant 0 : index
      %c0_11 = arith.constant 0 : index
      %12 = vector.load %arg7[%c0_10, %c0_11] : memref<16x128xf32, #tpu.memory_space<vmem>>, vector<16x128xf32>
      %c0_12 = arith.constant 0 : index
      %c0_13 = arith.constant 0 : index
      %13 = vector.load %arg5[%c0_12, %c0_13] : memref<1x128xf32, #tpu.memory_space<vmem>>, vector<1x128xf32>
      %14 = vector.broadcast %13 : vector<1x128xf32> to vector<16x128xf32>
      %15 = arith.addf %12, %14 : vector<16x128xf32>
      %c0_14 = arith.constant 0 : index
      %c0_15 = arith.constant 0 : index
      %16 = vector.load %arg6[%c0_14, %c0_15] : memref<16x128xf32, #tpu.memory_space<vmem>>, vector<16x128xf32>
      tpu.vector_store %arg6[%c0_14, %c0_15], %15 {strides = array<i32>} : memref<16x128xf32, #tpu.memory_space<vmem>>, vector<16x128xf32>,
    } else {
    }
    return
  }
  func.func @transform_0(%arg0: i32, %arg1: i32, %arg2: i32) -> (i32, i32) {
    %c0_i32 = arith.constant 0 : i32
    return %arg0, %arg2 : i32, i32
  }
  func.func @transform_1(%arg0: i32, %arg1: i32, %arg2: i32) -> (i32, i32) {
    %c0_i32 = arith.constant 0 : i32
    return %arg2, %arg1 : i32, i32
  }
  func.func @transform_2(%arg0: i32, %arg1: i32, %arg2: i32) -> (i32, i32) {
    %c0_i32 = arith.constant 0 : i32
    %c0_i32_0 = arith.constant 0 : i32
    return %c0_i32, %arg1 : i32, i32
  }
  func.func @transform_3(%arg0: i32, %arg1: i32, %arg2: i32) -> (i32, i32) {
    %c0_i32 = arith.constant 0 : i32
    return %arg0, %arg1 : i32, i32
  }
}

</mosaic_0001>

<bundles_post_ra>
// kernel: a_call__.5
= control target key start
LH: loop header
LB: loop body
LE: loop exit
PB: predicated region body
PF: predicated region fallthrough
CT: control target
= control target key end

     0   :  { %s276_s1 = inlined_call_operand.vmem [shape: f32[128,128], index: 1, kind: input, shape index: {}]   ;;  %s277_s0 = inlined_call_operand.vmem [shape: f32[16,128], index: 0, kind: input, shape index: {}]   ;;  %s278_s2 = inlined_call_operand.vmem [shape: f32[1,128], index: 2, kind: input, shape index: {}]   ;;  %s279_s3 = inlined_call_operand.vmem [shape: f32[16,128], index: 3, kind: output, shape index: {}]  }
   0x1   :  { %v39_v0 = vld [vmem:[%s276_s1 + $0x78] sm:$0xff]  ;;  %v38_v1 = vld [vmem:[%s276_s1 + $0x70] sm:$0xff]  ;;  %v37_v2 = vld [vmem:[%s276_s1 + $0x68] sm:$0xff] }
   0x2   :  { %158 = vmatprep.subr.mxu0 %v39_v0  ;;  %v36_v3 = vld [vmem:[%s276_s1 + $0x60] sm:$0xff]  ;;  %v35_v5 = vld [vmem:[%s276_s1 + $0x58] sm:$0xff]  ;;  %v34_v6 = vld [vmem:[%s276_s1 + $0x50] sm:$0xff] }
   0x3   :  { %159 = vmatpush3.msra.mxu0 %v39_v0  ;;  %v22_v4 = vld [vmem:[%s277_s0] sm:$0xff]  ;;  %v33_v7 = vld [vmem:[%s276_s1 + $0x48] sm:$0xff]  ;;  %v31_v9 = vld [vmem:[%s276_s1 + $0x38] sm:$0xff] }
   0x4   :  { %160 = vmatprep.subr.mxu0 %v38_v1  ;;  %190 = vmatprep.mubr.f32.mxu0 %v22_v4  ;;  %v32_v8 = vld [vmem:[%s276_s1 + $0x40] sm:$0xff]  ;;  %v30_v10 = vld [vmem:[%s276_s1 + $0x30] sm:$0xff]  ;;  %v29_v11 = vld [vmem:[%s276_s1 + $0x28] sm:$0xff] }
   0x5   :  { %161 = vmatpush3.msra.mxu0 %v38_v1  ;;  %v28_v12 = vld [vmem:[%s276_s1 + $0x20] sm:$0xff]  ;;  %v27_v13 = vld [vmem:[%s276_s1 + $0x18] sm:$0xff]  ;;  %v26_v14 = vld [vmem:[%s276_s1 + $0x10] sm:$0xff] }
   0x6   :  { %162 = vmatprep.subr.mxu0 %v37_v2  ;;  %v25_v15 = vld [vmem:[%s276_s1 + $0x8] sm:$0xff]  ;;  %v24_v16 = vld [vmem:[%s276_s1] sm:$0xff] }
   0x7   :  { %163 = vmatpush3.msra.mxu0 %v37_v2  ;;  %v23_v17 = vld [vmem:[%s277_s0 + $0x8] sm:$0xff]  ;;  %v139_v18 = vld [vmem:[%s278_s2] ss:$0 sm:$0xff] }
   0x8   :  { %164 = vmatprep.subr.mxu0 %v36_v3 }
   0x9   :  { %165 = vmatpush3.msra.mxu0 %v36_v3 }
   0xa   :  { %166 = vmatprep.subr.mxu0 %v35_v5 }
   0xb   :  { %167 = vmatpush3.msra.mxu0 %v35_v5 }
   0xc   :  { %168 = vmatprep.subr.mxu0 %v34_v6 }
   0xd   :  { %169 = vmatpush3.msra.mxu0 %v34_v6 }
   0xe   :  { %170 = vmatprep.subr.mxu0 %v33_v7 }
   0xf   :  { %171 = vmatpush3.msra.mxu0 %v33_v7 }
  0x10   :  { %172 = vmatprep.subr.mxu0 %v32_v8 }
  0x11   :  { %173 = vmatpush3.msra.mxu0 %v32_v8 }
  0x12   :  { %174 = vmatprep.subr.mxu0 %v31_v9 }
  0x13   :  { %175 = vmatpush3.msra.mxu0 %v31_v9 }
  0x14   :  { %176 = vmatprep.subr.mxu0 %v30_v10 }
  0x15   :  { %177 = vmatpush3.msra.mxu0 %v30_v10 }
  0x16   :  { %178 = vmatprep.subr.mxu0 %v29_v11 }
  0x17   :  { %179 = vmatpush3.msra.mxu0 %v29_v11 }
  0x18   :  { %180 = vmatprep.subr.mxu0 %v28_v12 }
  0x19   :  { %181 = vmatpush3.msra.mxu0 %v28_v12 }
  0x1a   :  { %182 = vmatprep.subr.mxu0 %v27_v13 }
  0x1b   :  { %183 = vmatpush3.msra.mxu0 %v27_v13 }
  0x1c   :  { %184 = vmatprep.subr.mxu0 %v26_v14 }
  0x1d   :  { %185 = vmatpush3.msra.mxu0 %v26_v14 }
  0x1e   :  { %186 = vmatprep.subr.mxu0 %v25_v15 }
  0x1f   :  { %187 = vmatpush3.msra.mxu0 %v25_v15 }
  0x20   :  { %188 = vmatprep.subr.mxu0 %v24_v16 }
  0x21   :  { %189 = vmatpush3.msra.mxu0 %v24_v16 }
  0x22   :  { %191 = vmatmul.mubr.f32.vlgmr.msra.gmra.mxu0 %v23_v17 }
  0xe2   :  { %v192_v19 = vpop.f32.mrf.mxu0 }
  0xe3   :  { %v132_v20 = vadd.f32 %v192_v19, %v139_v18 }
  0xe4   :  { %v106_v21 = vpop.f32.mrf.mxu0 }
  0xe5   :  { %134 = vst [vmem:[%s279_s3 + $0x8] sm:$0xff] %v132_v20  ;;  %v131_v22 = vadd.f32 %v139_v18, %v106_v21 }
  0xe7   :  { %133 = vst [vmem:[%s279_s3] sm:$0xff] %v131_v22 }

// kernel: a_call__.3
= control target key start
LH: loop header
LB: loop body
LE: loop exit
PB: predicated region body
PF: predicated region fallthrough
CT: control target
= control target key end

     0   :  { %8 = vsyncpa [#allocation4], 0  ;;  %s233_s12 = smov [#allocation3]   ;;  %s274_s0 = inlined_call_operand.vmem [shape: f32[16,128], index: 0, kind: input, shape index: {}]   ;;  %s275_s1 = inlined_call_operand.hbm [shape: f32[128,128], index: 1, kind: input, shape index: {}]   ;;  %s276_s2 = inlined_call_operand.vmem [shape: f32[1,128], index: 2, kind: input, shape index: {}]   ;;  %s277_s3 = inlined_call_operand.vmem [shape: f32[16,128], index: 3, kind: output, shape index: {}]  }
   0x1   :  { %s16_s13 = sshll.u32 %s233_s12, 4  ;;  %s17_s13 = int_to_ptr.vmem [resolvable:$true] %s16_s13 }
   0x2   :  { %s219_s14 = scalar_lea.vmem %s17_s13, 2048  ;;  %p224_p1 = scmp.lt.s32.totalorder %s17_s13, %s17_s13 }
   0x3   :  { %p220_p0 = scmp.ne.s32.totalorder %s17_s13, %s219_s14  ;;  %p225_p2 = scmp.lt.s32.totalorder %s219_s14, %s219_s14 }
   0x5   :  { %p226_p3 = por %p225_p2, %p224_p1 }
   0x7   :  { %p227_p4 = pnand %p226_p3, %p220_p0 }
   0x9   :  { %230 = shalt.err (!%p227_p4)
}
   0xa   :  { %s234_s15 = smov 128   ;;  %s235_s16 = smov 8  }
   0xb   :  { %22 = dma.hbm_to_vmem [thread:$0]  %s275_s1, 2048, %s17_s13, [#allocation4], %s234_s15, %s234_s15, %s235_s16  }
   0xc   :  { %231 = dma.done.wait [#allocation4], 2048  }
   0xd   :  { %232 = vsyncadd [#allocation4], 4294965248  ;;  %v53_v0 = vld [vmem:[#allocation3 + $0x78] sm:$0xff]  ;;  %v52_v1 = vld [vmem:[#allocation3 + $0x70] sm:$0xff] }
   0xe   :  { %173 = vmatprep.subr.mxu0 %v53_v0  ;;  %v51_v2 = vld [vmem:[#allocation3 + $0x68] sm:$0xff]  ;;  %v50_v3 = vld [vmem:[#allocation3 + $0x60] sm:$0xff]  ;;  %v49_v5 = vld [vmem:[#allocation3 + $0x58] sm:$0xff] }
   0xf   :  { %174 = vmatpush3.msra.mxu0 %v53_v0  ;;  %v36_v4 = vld [vmem:[%s274_s0] sm:$0xff]  ;;  %v48_v6 = vld [vmem:[#allocation3 + $0x50] sm:$0xff]  ;;  %v47_v7 = vld [vmem:[#allocation3 + $0x48] sm:$0xff] }
  0x10   :  { %175 = vmatprep.subr.mxu0 %v52_v1  ;;  %205 = vmatprep.mubr.f32.mxu0 %v36_v4  ;;  %v46_v8 = vld [vmem:[#allocation3 + $0x40] sm:$0xff]  ;;  %v45_v9 = vld [vmem:[#allocation3 + $0x38] sm:$0xff]  ;;  %v44_v10 = vld [vmem:[#allocation3 + $0x30] sm:$0xff] }
  0x11   :  { %176 = vmatpush3.msra.mxu0 %v52_v1  ;;  %v43_v11 = vld [vmem:[#allocation3 + $0x28] sm:$0xff]  ;;  %v42_v12 = vld [vmem:[#allocation3 + $0x20] sm:$0xff]  ;;  %v41_v13 = vld [vmem:[#allocation3 + $0x18] sm:$0xff] }
  0x12   :  { %177 = vmatprep.subr.mxu0 %v51_v2  ;;  %v40_v14 = vld [vmem:[#allocation3 + $0x10] sm:$0xff]  ;;  %v39_v15 = vld [vmem:[#allocation3 + $0x8] sm:$0xff]  ;;  %v38_v16 = vld [vmem:[#allocation3] sm:$0xff] }
  0x13   :  { %178 = vmatpush3.msra.mxu0 %v51_v2  ;;  %v37_v17 = vld [vmem:[%s274_s0 + $0x8] sm:$0xff]  ;;  %v154_v18 = vld [vmem:[%s276_s2] ss:$0 sm:$0xff] }
  0x14   :  { %179 = vmatprep.subr.mxu0 %v50_v3 }
  0x15   :  { %180 = vmatpush3.msra.mxu0 %v50_v3 }
  0x16   :  { %181 = vmatprep.subr.mxu0 %v49_v5 }
  0x17   :  { %182 = vmatpush3.msra.mxu0 %v49_v5 }
  0x18   :  { %183 = vmatprep.subr.mxu0 %v48_v6 }
  0x19   :  { %184 = vmatpush3.msra.mxu0 %v48_v6 }
  0x1a   :  { %185 = vmatprep.subr.mxu0 %v47_v7 }
  0x1b   :  { %186 = vmatpush3.msra.mxu0 %v47_v7 }
  0x1c   :  { %187 = vmatprep.subr.mxu0 %v46_v8 }
  0x1d   :  { %188 = vmatpush3.msra.mxu0 %v46_v8 }
  0x1e   :  { %189 = vmatprep.subr.mxu0 %v45_v9 }
  0x1f   :  { %190 = vmatpush3.msra.mxu0 %v45_v9 }
  0x20   :  { %191 = vmatprep.subr.mxu0 %v44_v10 }
  0x21   :  { %192 = vmatpush3.msra.mxu0 %v44_v10 }
  0x22   :  { %193 = vmatprep.subr.mxu0 %v43_v11 }
  0x23   :  { %194 = vmatpush3.msra.mxu0 %v43_v11 }
  0x24   :  { %195 = vmatprep.subr.mxu0 %v42_v12 }
  0x25   :  { %196 = vmatpush3.msra.mxu0 %v42_v12 }
  0x26   :  { %197 = vmatprep.subr.mxu0 %v41_v13 }
  0x27   :  { %198 = vmatpush3.msra.mxu0 %v41_v13 }
  0x28   :  { %199 = vmatprep.subr.mxu0 %v40_v14 }
  0x29   :  { %200 = vmatpush3.msra.mxu0 %v40_v14 }
  0x2a   :  { %201 = vmatprep.subr.mxu0 %v39_v15 }
  0x2b   :  { %202 = vmatpush3.msra.mxu0 %v39_v15 }
  0x2c   :  { %203 = vmatprep.subr.mxu0 %v38_v16 }
  0x2d   :  { %204 = vmatpush3.msra.mxu0 %v38_v16 }
  0x2e   :  { %206 = vmatmul.mubr.f32.vlgmr.msra.gmra.mxu0 %v37_v17 }
  0xee   :  { %v207_v19 = vpop.f32.mrf.mxu0 }
  0xef   :  { %v146_v20 = vadd.f32 %v207_v19, %v154_v18 }
  0xf0   :  { %v120_v21 = vpop.f32.mrf.mxu0 }
  0xf1   :  { %148 = vst [vmem:[%s277_s3 + $0x8] sm:$0xff] %v146_v20  ;;  %v145_v22 = vadd.f32 %v154_v18, %v120_v21 }
  0xf3   :  { %147 = vst [vmem:[%s277_s3] sm:$0xff] %v145_v22 }
  0xf4   :  { %153 = vsyncpa [#allocation4], 1 }

// kernel: a_call__.4
= control target key start
LH: loop header
LB: loop body
LE: loop exit
PB: predicated region body
PF: predicated region fallthrough
CT: control target
= control target key end

     0   :  { %10 = vsyncpa [#allocation3], 0  ;;  %s1677_s0 = inlined_call_operand.vmem [shape: f32[2,4,8,8], index: 0, kind: input, shape index: {}]   ;;  %s1678_s1 = inlined_call_operand.vmem [shape: f32[2,4,8,8], index: 1, kind: input, shape index: {}]   ;;  %s1679_s2 = inlined_call_operand.vmem [shape: f32[2,4,8,8], index: 2, kind: input, shape index: {}]   ;;  %s1680_s3 = inlined_call_operand.vmem [shape: f32[2,8,32], index: 3, kind: output, shape index: {0}]   ;;  %s1681_s4 = inlined_call_operand.hbm [shape: f32[2,8,8], index: 4, kind: output, shape index: {1}]  }
   0x1   :  { %12 = vsyncpa [#allocation3 + $0x1], 0  ;;  %s1495_s15 = smov 0   ;;  %s1497_s16 = smov 0  }
   0x2   :  { %s1499_s17 = smov 0   ;;  %s1501_s18 = smov 0  }
   0x3   :  { %s1503_s19 = smov 0   ;;  %s1505_s20 = smov 0  }
   0x4 LB: > { %s1222_s21 = sadd.s32 4294967295, %s1462_s20   ;;  %s1223_s22 = sadd.s32 4294967294, %s1462_s20   ;;  %s1462_s20 = sphi %s1505_s20, %s18_s20   ;;  %s1458_s19 = sphi %s1503_s19, %s1688_s19   ;;  %s1454_s18 = sphi %s1501_s18, %s1687_s18   ;;  %s1450_s17 = sphi %s1499_s17, %s1686_s17   ;;  %s1446_s16 = sphi %s1497_s16, %s1685_s16   ;;  %s1442_s15 = sphi %s1495_s15, %s1684_s15  }
   0x5   : > { %s37_s23 = sadd.s32 1, %s1458_s19  ;;  %s162_s24 = sadd.s32 1, %s1450_s17 }
   0x6   : > { %p39_p0 = scmp.ge.s32.totalorder %s37_s23, 2  ;;  %p172_p1 = scmp.ne.s32.totalorder %s1450_s17, %s1446_s16 }
   0x7   : > { %p173_p2 = scmp.eq.s32.totalorder %s1222_s21, 1  ;;  %p178_p3 = scmp.ne.s32.totalorder %s1446_s16, %s1442_s15 }
   0x8   : > { %s1690_s23 = smov (%p39_p0, %s37_s23), 0  ;;  %p179_p5 = scmp.eq.s32.totalorder %s1223_s22, 1 }
   0x9   : > { %p1535_p4 = por %p173_p2, %p172_p1  ;;  %s157_s26 = ssub.s32 %s1458_s19, %s1690_s23 }
   0xa   : > { %p1226_p6 = scmp.ge.s32.totalorder %s1462_s20, 1  ;;  %p160_p7 = scmp.eq.s32.totalorder %s157_s26, 0 }
   0xb   : > { %p1542_p8 = por %p179_p5, %p178_p3  ;;  %p239_p9 = scmp.lt.s32.totalorder %s1462_s20, 3 }
   0xc   : > { %s1548_s28 = scalar_select %p160_p7, %s1450_s17, %s162_s24  }
   0xd   : > { %p240_p10 = pnand %p1226_p6, %p239_p9 }
   0xe   : > { %p301_p11 = scmp.lt.s32.totalorder (!%p240_p10), %s1454_s18, 1  ;;  %s297_s14 = sand.u32 (!%p240_p10), 1, %s1446_s16  }
   0xf   : > { %243 = sbr.rel (%p240_p10) target bundleno = 852 (0x354), region = 32  ;;  %s1227_s21 = sshll.u32 (!%p240_p10), %s297_s14, 3 }
  0x10   : > { %s1608_s22 = scalar_lea.vmem (!%p240_p10), [#allocation2], %s1227_s21  ;;  %s1248_s24 = sshll.u32 (!%p240_p10), %s1454_s18, 7 }
  0x11   : > { %s1068_s26 = sshll.u32 (!%p240_p10), %s1608_s22, 4  ;;  %s1066_s6 = scalar_lea.hbm (!%p240_p10), %s1681_s4, %s1248_s24  ;;  %s1069_s26 = int_to_ptr.vmem [resolvable:$true] %s1068_s26 }
  0x12   : > { %s1386_s8 = scalar_lea.vmem (!%p240_p10), %s1069_s26, 128  ;;  %s1466_s9 = smov (!%p240_p10), [#allocation2]  }
  0x13   : > { %p1387_p12 = scmp.ne.s32.totalorder (!%p240_p10), %s1069_s26, %s1386_s8 }
  0x14   : > { %v1464_v0 = vmov 0.0   ;;  %vm1465_vm0 = vmmov 0   ;;  %s1555_s29 = scalar_select %p301_p11, %s1454_s18, 1  ;;  %vm355_vm1 = vcmask 64512  }
  0x15   : > { %1270 = vmatprep.subr.mxu0 %v1464_v0  ;;  %1272 = vmatprep.mubr.msk.f32.mxu0 %vm1465_vm0, %v1464_v0  ;;  %1023 = vst.msk [vmem:[%s1608_s22] sm:$0xff] %vm355_vm1, %v1464_v0  ;;  %p1388_p13 = pnand %p1387_p12, %p1535_p4 }
  0x16   : > { %1275 = vmatprep.subr.mxu1 %v1464_v0  ;;  %1277 = vmatprep.mubr.msk.f32.mxu1 %vm1465_vm0, %v1464_v0  ;;  %s1561_s30 = sshll.u32 %s1555_s29, 5 }
  0x17   : > { %s311_s7 = scalar_lea.vmem %s1677_s0, %s1561_s30  ;;  %s321_s10 = scalar_lea.vmem %s1678_s1, %s1561_s30 }
  0x18   : > { %v351_v1 = vld [vmem:[%s321_s10] sm:$0xff]  ;;  %v352_v3 = vld [vmem:[%s321_s10 + $0x8] sm:$0xff]  ;;  %v345_v6 = vld [vmem:[%s311_s7 + $0x10] sm:$0xff]  ;;  %s331_s13 = scalar_lea.vmem %s1679_s2, %s1561_s30  ;;  %p1389_p0 = pneg %p1388_p13 }
  0x19   : > { %v343_v2 = vld [vmem:[%s311_s7] sm:$0xff]  ;;  %1271 = vmatpush3.xpose.msk.msra.mxu0 %vm355_vm1, %v351_v1  ;;  %1276 = vmatpush3.xpose.msk.msra.mxu1 %vm355_vm1, %v352_v3  ;;  %v344_v5 = vld [vmem:[%s311_s7 + $0x8] sm:$0xff]  ;;  %v353_v7 = vld [vmem:[%s321_s10 + $0x10] sm:$0xff]  ;;  %v349_v11 = vmul.f32 0.35355338, %v345_v6 }
  0x1a   : > { %v347_v4 = vmul.f32 0.35355338, %v343_v2  ;;  %1280 = vmatprep.subr.mxu0 %v1464_v0  ;;  %v348_v8 = vmul.f32 0.35355338, %v344_v5  ;;  %1285 = vmatprep.subr.mxu1 %v1464_v0  ;;  %v346_v9 = vld [vmem:[%s311_s7 + $0x18] sm:$0xff]  ;;  %v704_v45 = vld [vmem:[%s331_s13] sm:$0xff] }
  0x1b   : > { %v354_v10 = vld [vmem:[%s321_s10 + $0x18] sm:$0xff]  ;;  %v350_v12 = vmul.f32 0.35355338, %v346_v9  ;;  %v705_v46 = vld [vmem:[%s331_s13 + $0x8] sm:$0xff]  ;;  %v706_v53 = vld [vmem:[%s331_s13 + $0x10] sm:$0xff]  ;;  %s1051_s7 = scalar_lea.sflag [#allocation3], %s297_s14 }
  0x1c   : > { %1273 = vmatmul.mubr.msk.f32.vlgmr.msra.gmra.mxu0 %vm355_vm1, %v347_v4  ;;  %1278 = vmatmul.mubr.msk.f32.vlgmr.msra.gmra.mxu1 %vm355_vm1, %v348_v8  ;;  %v707_v57 = vld [vmem:[%s331_s13 + $0x18] sm:$0xff]  ;;  %v1024_v4 = vld [vmem:[%s1608_s22] sm:$0xff]  ;;  %s1390_s10 = sshll.u32 %s1466_s9, 4  ;;  %s1391_s10 = int_to_ptr.vmem [resolvable:$false] %s1390_s10 }
  0x1d   : > { %1281 = vmatpush3.xpose.msk.msra.mxu0 %vm355_vm1, %v353_v7  ;;  %1282 = vmatprep.mubr.msk.f32.mxu0 %vm1465_vm0, %v1464_v0  ;;  %s1392_s11 = scalar_lea.vmem %s1391_s10, 256  ;;  %p1393_p1 = scmp.lt.s32.totalorder %s1069_s26, %s1391_s10 }
  0x1e   : > { %1286 = vmatpush3.xpose.msk.msra.mxu1 %vm355_vm1, %v354_v10  ;;  %1287 = vmatprep.mubr.msk.f32.mxu1 %vm1465_vm0, %v1464_v0  ;;  %p1394_p2 = scmp.lt.s32.totalorder %s1392_s11, %s1386_s8 }
  0x1f   : > { %1290 = vmatprep.subr.mxu0 %v1464_v0  ;;  %1295 = vmatprep.subr.mxu1 %v1464_v0 }
  0x20   : > { %1283 = vmatmul.mubr.msk.f32.vlgmr.msra.gmra.mxu0 %vm355_vm1, %v349_v11  ;;  %p1395_p3 = por %p1394_p2, %p1393_p1 }
  0x21   : > { %1288 = vmatmul.mubr.msk.f32.vlgmr.msra.gmra.mxu1 %vm355_vm1, %v350_v12  ;;  %1292 = vmatprep.mubr.msk.f32.mxu0 %vm1465_vm0, %v1464_v0 }
  0x22   : > { %1297 = vmatprep.mubr.msk.f32.mxu1 %vm1465_vm0, %v1464_v0  ;;  %1291 = vmatpush3.msra.mxu0 %v704_v45  ;;  %p1396_p5 = pnand %p1395_p3, %p1389_p0 }
  0x23   : > { %1300 = vmatprep.subr.mxu0 %v1464_v0  ;;  %1296 = vmatpush3.msra.mxu1 %v705_v46 }
  0x24   : > { %1305 = vmatprep.subr.mxu1 %v1464_v0 }
  0xdc   : > { %v428_v13 = vpop.f32.mrf.mxu0  ;;  %v504_v14 = vpop.f32.mrf.mxu1 }
  0xdd   : > { %v660_v15 = vsel %vm355_vm1, %v428_v13, -inf  ;;  %v663_v18 = vsel %vm355_vm1, %v504_v14, -inf }
  0xde   : > { %661 = vmax.xlane.f32.xlu0 %v660_v15  ;;  %v1274_v16 = vpop.f32.mrf.mxu0  ;;  %v1279_v17 = vpop.f32.mrf.mxu1 }
  0xe0   : > { %v580_v19 = vpop.f32.mrf.mxu0 }
  0xe1   : > { %v666_v20 = vsel %vm355_vm1, %v580_v19, -inf  ;;  %v656_v21 = vpop.f32.mrf.mxu1 }
  0xe2   : > { %664 = vmax.xlane.f32.xlu0 %v663_v18  ;;  %667 = vmax.xlane.f32.xlu1 %v666_v20  ;;  %v1284_v22 = vpop.f32.mrf.mxu0  ;;  %v669_v24 = vsel %vm355_vm1, %v656_v21, -inf }
  0xe3   : > { %v1289_v23 = vpop.f32.mrf.mxu1 }
  0xe6   : > { %670 = vmax.xlane.f32.xlu1 %v669_v24 }
 0x167   : > { %v662_v25 = vpop.xlane.xlu0 %661 }
 0x168   : > { %v672_v26 = vsub.f32 %v428_v13, %v662_v25 }
 0x16a   : > { %v676_v27 = vmul.f32 1.442695, %v672_v26 }
 0x16b   : > { %v665_v28 = vpop.xlane.xlu0 %664  ;;  %v668_v29 = vpop.xlane.xlu1 %667 }
 0x16c   : > { %1370 = vpow2.f32 %v676_v27  ;;  %v673_v30 = vsub.f32 %v504_v14, %v665_v28  ;;  %v674_v31 = vsub.f32 %v580_v19, %v668_v29 }
 0x16e   : > { %v678_v32 = vmul.f32 1.442695, %v673_v30  ;;  %v680_v33 = vmul.f32 1.442695, %v674_v31 }
 0x16f   : > { %v671_v34 = vpop.xlane.xlu1 %670 }
 0x170   : > { %1372 = vpow2.f32 %v678_v32  ;;  %v675_v35 = vsub.f32 %v656_v21, %v671_v34 }
 0x171   : > { %1374 = vpow2.f32 %v680_v33 }
 0x172   : > { %v682_v36 = vmul.f32 1.442695, %v675_v35 }
 0x174   : > { %1376 = vpow2.f32 %v682_v36 }
 0x179   : > { %v1371_v37 = vpop.eup %1370 }
 0x17a   : > { %v684_v38 = vsel %vm355_vm1, %v1371_v37, 0.0 }
 0x17b   : > { %685 = vadd.xlane.f32.xlu0 %v684_v38 }
 0x17d   : > { %v1373_v39 = vpop.eup %1372 }
 0x17e   : > { %v1375_v40 = vpop.eup %1374  ;;  %v687_v41 = vsel %vm355_vm1, %v1373_v39, 0.0 }
 0x17f   : > { %688 = vadd.xlane.f32.xlu1 %v687_v41  ;;  %v690_v42 = vsel %vm355_vm1, %v1375_v40, 0.0 }
 0x180   : > { %691 = vadd.xlane.f32.xlu0 %v690_v42 }
 0x181   : > { %v1377_v43 = vpop.eup %1376 }
 0x182   : > { %v693_v44 = vsel %vm355_vm1, %v1377_v43, 0.0 }
 0x183   : > { %694 = vadd.xlane.f32.xlu1 %v693_v44 }
 0x204   : > { %v686_v47 = vpop.xlane.xlu0 %685 }
 0x205   : > { %1378 = vrcp.f32 %v686_v47 }
 0x208   : > { %v689_v48 = vpop.xlane.xlu1 %688 }
 0x209   : > { %v692_v49 = vpop.xlane.xlu0 %691  ;;  %1380 = vrcp.f32 %v689_v48 }
 0x20a   : > { %1382 = vrcp.f32 %v692_v49 }
 0x20c   : > { %v695_v50 = vpop.xlane.xlu1 %694 }
 0x20d   : > { %1384 = vrcp.f32 %v695_v50 }
 0x212   : > { %v1379_v51 = vpop.eup %1378 }
 0x213   : > { %v697_v52 = vmul.f32 %v1379_v51, %v1371_v37 }
 0x215   : > { %1293 = vmatmul.mubr.msk.f32.vlgmr.msra.gmra.mxu0 %vm355_vm1, %v697_v52  ;;  %v1025_v59 = vsel %vm355_vm1, %v697_v52, 0.0 }
 0x216   : > { %v1381_v54 = vpop.eup %1380  ;;  %1301 = vmatpush3.msra.mxu0 %v706_v53  ;;  %1302 = vmatprep.mubr.msk.f32.mxu0 %vm1465_vm0, %v1464_v0 }
 0x217   : > { %v1383_v55 = vpop.eup %1382  ;;  %v699_v56 = vmul.f32 %v1381_v54, %v1373_v39 }
 0x218   : > { %v701_v58 = vmul.f32 %v1383_v55, %v1375_v40 }
 0x219   : > { %1298 = vmatmul.mubr.msk.f32.vlgmr.msra.gmra.mxu1 %vm355_vm1, %v699_v56  ;;  %v1026_v60 = vsel %vm355_vm1, %v699_v56, 0.0 }
 0x21a   : > { %v1385_v61 = vpop.eup %1384  ;;  %v1027_v62 = vadd.f32 %v1026_v60, %v1025_v59  ;;  %1303 = vmatmul.mubr.msk.f32.vlgmr.msra.gmra.mxu0 %vm355_vm1, %v701_v58  ;;  %1306 = vmatpush3.msra.mxu1 %v707_v57  ;;  %v1028_v63 = vsel %vm355_vm1, %v701_v58, 0.0 }
 0x21b   : > { %1307 = vmatprep.mubr.msk.f32.mxu1 %vm1465_vm0, %v1464_v0  ;;  %v703_v1 = vmul.f32 %v1385_v61, %v1377_v43 }
 0x21c   : > { %v1029_v2 = vadd.f32 %v1028_v63, %v1027_v62 }
 0x21d   : > { %1308 = vmatmul.mubr.msk.f32.vlgmr.msra.gmra.mxu1 %vm355_vm1, %v703_v1  ;;  %v1030_v3 = vsel %vm355_vm1, %v703_v1, 0.0 }
 0x21e   : > { %v1031_v5 = vadd.f32 %v1030_v3, %v1029_v2 }
 0x220   : > { %v1032_v6 = vadd.f32 %v1031_v5, %v1024_v4 }
 0x222   : > { %1033 = vst.msk [vmem:[%s1608_s22] sm:$0xff] %vm355_vm1, %v1032_v6 }
 0x229   : > { %v1037_v7 = vld [vmem:[%s1608_s22] sm:$0xff] }
 0x22a   : > { %v1038_v8 = vmul.f32 0.25, %v1037_v7 }
 0x22c   : > { %1039 = vst.msk [vmem:[%s1608_s22] sm:$0xff] %vm355_vm1, %v1038_v8 }
 0x22d   : > { %1399 = shalt.err (!%p1396_p5)
}
 0x22e   : > { %s1400_s18 = scalar_lea.hbm %s1066_s6, 128  ;;  %s1404_s14 = scalar_lea.hbm %s1681_s4, 256 }
 0x22f   : > { %p1401_p6 = scmp.ne.s32.totalorder %s1066_s6, %s1400_s18  ;;  %p1405_p10 = scmp.lt.s32.totalorder %s1066_s6, %s1681_s4 }
 0x230   : > { %p1406_p11 = scmp.lt.s32.totalorder %s1404_s14, %s1400_s18 }
 0x231   : > { %p1402_p7 = pnand %p1401_p6, %p1535_p4 }
 0x232   : > { %p1407_p12 = por %p1406_p11, %p1405_p10 }
 0x233   : > { %p1403_p9 = pneg %p1402_p7 }
 0x235   : > { %p1408_p13 = pnand %p1407_p12, %p1403_p9 }
 0x237   : > { %1411 = shalt.err (!%p1408_p13)
}
 0x238   : > { %1310 = dma.vmem_to_hbm [thread:$0]  (%p1535_p4), %s1069_s26, 128, %s1066_s6, %s1051_s7   ;;  %vm1013_vm2 = vcmask 130048   ;;  %vm1015_vm3 = vcmask 195584   ;;  %vm1017_vm4 = vcmask 261120  }
 0x239   : > { %s1467_s24 = smov 8   ;;  %s1468_s30 = smov 16  }
 0x23a   : > { %s1469_s5 = smov 24   ;;  %s1234_s8 = sshll.u32 %s1555_s29, 3 }
 0x23b   : > { %s342_s6 = scalar_lea.vmem %s1680_s3, %s1234_s8 }
 0x2d5   : > { %v777_v0 = vpop.f32.mrf.mxu0 }
 0x2d7   : > { %v1294_v9 = vpop.f32.mrf.mxu0 }
 0x2d9   : > { %v850_v10 = vpop.f32.mrf.mxu1 }
 0x2da   : > { %v923_v11 = vpop.f32.mrf.mxu0  ;;  %1001 = vrot.lane.b32.xlu0 %v850_v10, %s1467_s24 }
 0x2db   : > { %1005 = vrot.lane.b32.xlu1 %v923_v11, %s1468_s30  ;;  %v1299_v12 = vpop.f32.mrf.mxu1 }
 0x2dc   : > { %v1304_v13 = vpop.f32.mrf.mxu0 }
 0x2dd   : > { %v996_v14 = vpop.f32.mrf.mxu1 }
 0x2df   : > { %1009 = vrot.lane.b32.xlu1 %v996_v14, %s1469_s5  ;;  %v1309_v15 = vpop.f32.mrf.mxu1 }
 0x34c   : > { %v1002_v16 = vpop.permute.xlu0 %1001 }
 0x34d   : > { %v1006_v17 = vpop.permute.xlu1 %1005  ;;  %v1012_v18 = vsel %vm355_vm1, %v777_v0, %v1002_v16 }
 0x34e   : > { %v1014_v19 = vsel %vm1013_vm2, %v1012_v18, %v1006_v17 }
 0x351   : > { %v1010_v20 = vpop.permute.xlu1 %1009 }
 0x352   : > { %v1016_v21 = vsel %vm1015_vm3, %v1014_v19, %v1010_v20 }
 0x353   : > { %1018 = vst.msk [vmem:[%s342_s6] sm:$0xff] %vm1017_vm4, %v1016_v21 }
 0x354 PF: > { %p1316_p4 = scmp.ge.s32.totalorder %s1462_s20, 2  ;;  %s1093_s7 = sand.u32 1, %s1442_s15  }
 0x355   : > { %s1094_s29 = scalar_lea.sflag [#allocation3], %s1093_s7 }
 0x356   : > { %p1313_p0 = pnand %p1316_p4, %p1542_p8 }
 0x358   : > { %p1314_p1 = pneg %p1313_p0 }
 0x35a   : > { %1437 = dma.done.wait (%p1314_p1), %s1094_s29, 128  }
 0x35b   : > { %1439 = vsyncadd (%p1314_p1), %s1094_s29, 4294967168  ;;  %s18_s20 = sadd.s32 1, %s1462_s20   ;;  %s1684_s15 = smov %s1446_s16 }
 0x35c   : > { %p15_p2 = scmp.ge.s32.totalorder %s18_s20, 4   ;;  %s1685_s16 = smov %s1450_s17 }
 0x35d   : > { %s1686_s17 = smov %s1548_s28  ;;  %s1687_s18 = smov %s1458_s19 }
 0x35e   : > { %s1688_s19 = smov %s1690_s23  ;;  %17 = sbr.rel (!%p15_p2) target bundleno = 4 (0x4), region = 93 }
 0x363   :  { %1099 = vsyncpa [#allocation3], 1 }
 0x364   :  { %1101 = vsyncpa [#allocation3 + $0x1], 1 }

</bundles_post_ra>
